<compile_context>
chip_gen: v5e
topology: v5e:2x2
jax: 0.10.0
libtpu: 0.0.40
codegen_flags: <defaults>
</compile_context>

<pallas_src>
import functools

import numpy as np
import jax
import jax.numpy as jnp
from jax.experimental import pallas as pl
from jax.experimental.pallas import tpu as pltpu

_LANES = 128
_GROUP = 8            # table entries per shared-compare group (power of 2)


# ----------------------------------------------------------------------------
# Parameter setup (matches the PyTorch __init__)
# ----------------------------------------------------------------------------
def cosine_beta_schedule_discrete(timesteps: int, s: float = 0.008) -> np.ndarray:
    """Discrete cosine schedule (Nichol & Dhariwal). Returns len = timesteps + 1."""
    steps = timesteps + 2
    x = np.linspace(0, steps, steps)
    alphas_cumprod = np.cos(0.5 * np.pi * ((x / steps) + s) / (1 + s)) ** 2
    alphas_cumprod = alphas_cumprod / alphas_cumprod[0]
    alphas = alphas_cumprod[1:] / alphas_cumprod[:-1]
    betas = 1.0 - alphas
    return betas.squeeze()


def build_betas(max_time: int) -> jnp.ndarray:
    betas = cosine_beta_schedule_discrete(max_time)
    betas = np.clip(betas, 0.0, 0.999).astype(np.float32)   # torch.clamp(0, 0.999)
    return jnp.asarray(betas)                                # (max_time + 1,)


# ----------------------------------------------------------------------------
# Pallas kernel: per (block_rows, 128) tile of normalized times, gather from SMEM
# ----------------------------------------------------------------------------
def _lookup_kernel(betas_smem, t_ref, out_ref, *, max_time: int, table_len: int):
    t = t_ref[...]                                           # (br, 128) f32, lane-dense
    # time_to_long: round(t * max_time), clamped so OOB t can't fall off the table.
    t_int = jnp.round(t * jnp.float32(max_time)).astype(jnp.int32)
    t_int = jnp.clip(t_int, 0, max_time)                     # (br, 128) int32

    # Shared-compare gather:
    #   g_idx = t_int // 8  -> one equality compare per group of 8 table entries
    #   low 3 bits of t_int -> 3-level select tree picks the entry within the group.
    g_idx = jnp.right_shift(t_int, 3)
    b0 = (t_int & 1) != 0
    b1 = (t_int & 2) != 0
    b2 = (t_int & 4) != 0

    num_groups = (table_len + _GROUP - 1) // _GROUP
    last = table_len - 1
    acc = jnp.zeros(t.shape, jnp.float32)

    # Python loop -> fully unrolled at trace time (table_len is a compile-time const).
    for k in range(num_groups):
        base = k * _GROUP

        def e(j, _base=base):
            # Clamped static scalar SMEM read; out-of-table leaves in the final
            # (partial) group are never selected because t_int <= max_time.
            return betas_smem[min(_base + j, last)]

        v01 = jnp.where(b0, e(1), e(0))
        v23 = jnp.where(b0, e(3), e(2))
        v45 = jnp.where(b0, e(5), e(4))
        v67 = jnp.where(b0, e(7), e(6))
        v03 = jnp.where(b1, v23, v01)
        v47 = jnp.where(b1, v67, v45)
        v = jnp.where(b2, v47, v03)
        acc = jnp.where(g_idx == k, v, acc)

    out_ref[...] = acc


def cosine_schedule_forward(t: jnp.ndarray, betas: jnp.ndarray, max_time: int,
                            *, block_rows: int = 256) -> jnp.ndarray:
    """Equivalent of CosineDiffusionSchedule.forward(t)."""
    B = t.shape[0]
    T1 = betas.shape[0]                                       # max_time + 1

    # Lane-dense layout: pad only the tail so B fits a whole number of blocks.
    rows_needed = -(-B // _LANES)
    rows_min = max(8, ((rows_needed + 7) // 8) * 8)           # sublane multiple
    br = max(8, (min(block_rows, rows_min) // 8) * 8)         # block rows (multiple of 8)
    rows = ((rows_min + br - 1) // br) * br
    pad = rows * _LANES - B

    t_flat = t.astype(jnp.float32)
    if pad:
        t_flat = jnp.pad(t_flat, (0, pad))                    # tail-only pad
    t_2d = t_flat.reshape(rows, _LANES)

    kernel = functools.partial(_lookup_kernel, max_time=max_time, table_len=T1)

    out = pl.pallas_call(
        kernel,
        out_shape=jax.ShapeDtypeStruct((rows, _LANES), jnp.float32),
        grid=(rows // br,),
        in_specs=[
            # betas table: whole array, resident in SMEM (~512 B padded for T1=101)
            pl.BlockSpec(memory_space=pltpu.MemorySpace.SMEM),
            # t: one (br, 128) tile per grid step, double-buffered by Pallas
            pl.BlockSpec((br, _LANES), lambda i: (i, 0)),
        ],
        out_specs=pl.BlockSpec((br, _LANES), lambda i: (i, 0)),
        compiler_params=pltpu.CompilerParams(
            dimension_semantics=("parallel",)),               # megacore sharding on v7x
    )(betas, t_2d)

    out_flat = out.reshape(rows * _LANES)
    return out_flat[:B] if pad else out_flat


# ----------------------------------------------------------------------------
# Demo / correctness check
# ----------------------------------------------------------------------------
if __name__ == "__main__":
    max_time = 100
    betas = build_betas(max_time)                             # (max_time + 1,)
    key = jax.random.PRNGKey(0)

    # Small batch (single block, mostly padding)
    t_small = jax.random.uniform(key, (2,), dtype=jnp.float32)
    out_small = jax.block_until_ready(cosine_schedule_forward(t_small, betas, max_time))

    # Larger batch with a tiny block to exercise the multi-step parallel grid + tail pad
    t_big = jax.random.uniform(jax.random.PRNGKey(1), (2500,), dtype=jnp.float32)
    out_big = jax.block_until_ready(
        cosine_schedule_forward(t_big, betas, max_time, block_rows=8))

    betas_np = np.asarray(betas)

    def ref_lookup(t_arr):
        t_np = np.asarray(t_arr, dtype=np.float32)
        idx = np.clip(np.round(t_np * np.float32(max_time)).astype(np.int64), 0, max_time)
        return betas_np[idx]

    np.testing.assert_allclose(np.asarray(out_small), ref_lookup(t_small), rtol=1e-6, atol=1e-7)
    np.testing.assert_allclose(np.asarray(out_big), ref_lookup(t_big), rtol=1e-6, atol=1e-7)

    print("KERNEL_OK")
</pallas_src>

<mosaic_0001>
module attributes {stable_mosaic.version = 11 : i64} {
  func.func @_lookup_kernel(%arg0: i32, %arg1: memref<101xf32, #tpu.memory_space<smem>>, %arg2: memref<8x128xf32, #tpu.memory_space<vmem>>, %arg3: memref<8x128xf32, #tpu.memory_space<vmem>>) attributes {dimension_semantics = [#tpu.dimension_semantics<parallel>], iteration_bounds = array<i64: 1>, scalar_prefetch = 0 : i64, scratch_operands = 0 : i64, tpu.core_type = #tpu.core_type<tc>, window_params = [{transform_indices = @transform_0, window_bounds = array<i64: 101>}, {transform_indices = @transform_1, window_bounds = array<i64: 8, 128>}, {transform_indices = @transform_2, window_bounds = array<i64: 8, 128>}]} {
    %c0 = arith.constant 0 : index
    %c0_0 = arith.constant 0 : index
    %0 = vector.load %arg2[%c0, %c0_0] : memref<8x128xf32, #tpu.memory_space<vmem>>, vector<8x128xf32>
    %cst = arith.constant 1.000000e+02 : f32
    %1 = vector.broadcast %cst : f32 to vector<8x128xf32>
    %2 = arith.mulf %0, %1 : vector<8x128xf32>
    %3 = math.roundeven %2 : vector<8x128xf32>
    %4 = arith.fptosi %3 : vector<8x128xf32> to vector<8x128xi32>
    %c0_i32 = arith.constant 0 : i32
    %c100_i32 = arith.constant 100 : i32
    %5 = vector.broadcast %c0_i32 : i32 to vector<8x128xi32>
    %6 = arith.maxsi %5, %4 : vector<8x128xi32>
    %7 = vector.broadcast %c100_i32 : i32 to vector<8x128xi32>
    %8 = arith.minsi %7, %6 : vector<8x128xi32>
    %c3_i32 = arith.constant 3 : i32
    %9 = vector.broadcast %c3_i32 : i32 to vector<8x128xi32>
    %10 = arith.shrsi %8, %9 : vector<8x128xi32>
    %c1_i32 = arith.constant 1 : i32
    %11 = vector.broadcast %c1_i32 : i32 to vector<8x128xi32>
    %12 = arith.andi %8, %11 : vector<8x128xi32>
    %c0_i32_1 = arith.constant 0 : i32
    %13 = vector.broadcast %c0_i32_1 : i32 to vector<8x128xi32>
    %14 = arith.cmpi ne, %12, %13 : vector<8x128xi32>
    %c2_i32 = arith.constant 2 : i32
    %15 = vector.broadcast %c2_i32 : i32 to vector<8x128xi32>
    %16 = arith.andi %8, %15 : vector<8x128xi32>
    %c0_i32_2 = arith.constant 0 : i32
    %17 = vector.broadcast %c0_i32_2 : i32 to vector<8x128xi32>
    %18 = arith.cmpi ne, %16, %17 : vector<8x128xi32>
    %c4_i32 = arith.constant 4 : i32
    %19 = vector.broadcast %c4_i32 : i32 to vector<8x128xi32>
    %20 = arith.andi %8, %19 : vector<8x128xi32>
    %c0_i32_3 = arith.constant 0 : i32
    %21 = vector.broadcast %c0_i32_3 : i32 to vector<8x128xi32>
    %22 = arith.cmpi ne, %20, %21 : vector<8x128xi32>
    %cst_4 = arith.constant 0.000000e+00 : f32
    %23 = vector.broadcast %cst_4 : f32 to vector<8x128xf32>
    %c1 = arith.constant 1 : index
    %24 = memref.load %arg1[%c1] : memref<101xf32, #tpu.memory_space<smem>>
    %c0_5 = arith.constant 0 : index
    %25 = memref.load %arg1[%c0_5] : memref<101xf32, #tpu.memory_space<smem>>
    %26 = vector.broadcast %24 : f32 to vector<8x128xf32>
    %27 = vector.broadcast %25 : f32 to vector<8x128xf32>
    %28 = arith.select %14, %26, %27 : vector<8x128xi1>, vector<8x128xf32>
    %c3 = arith.constant 3 : index
    %29 = memref.load %arg1[%c3] : memref<101xf32, #tpu.memory_space<smem>>
    %c2 = arith.constant 2 : index
    %30 = memref.load %arg1[%c2] : memref<101xf32, #tpu.memory_space<smem>>
    %31 = vector.broadcast %29 : f32 to vector<8x128xf32>
    %32 = vector.broadcast %30 : f32 to vector<8x128xf32>
    %33 = arith.select %14, %31, %32 : vector<8x128xi1>, vector<8x128xf32>
    %c5 = arith.constant 5 : index
    %34 = memref.load %arg1[%c5] : memref<101xf32, #tpu.memory_space<smem>>
    %c4 = arith.constant 4 : index
    %35 = memref.load %arg1[%c4] : memref<101xf32, #tpu.memory_space<smem>>
    %36 = vector.broadcast %34 : f32 to vector<8x128xf32>
    %37 = vector.broadcast %35 : f32 to vector<8x128xf32>
    %38 = arith.select %14, %36, %37 : vector<8x128xi1>, vector<8x128xf32>
    %c7 = arith.constant 7 : index
    %39 = memref.load %arg1[%c7] : memref<101xf32, #tpu.memory_space<smem>>
    %c6 = arith.constant 6 : index
    %40 = memref.load %arg1[%c6] : memref<101xf32, #tpu.memory_space<smem>>
    %41 = vector.broadcast %39 : f32 to vector<8x128xf32>
    %42 = vector.broadcast %40 : f32 to vector<8x128xf32>
    %43 = arith.select %14, %41, %42 : vector<8x128xi1>, vector<8x128xf32>
    %44 = arith.select %18, %33, %28 : vector<8x128xi1>, vector<8x128xf32>
    %45 = arith.select %18, %43, %38 : vector<8x128xi1>, vector<8x128xf32>
    %46 = arith.select %22, %45, %44 : vector<8x128xi1>, vector<8x128xf32>
    %c0_i32_6 = arith.constant 0 : i32
    %47 = vector.broadcast %c0_i32_6 : i32 to vector<8x128xi32>
    %48 = arith.cmpi eq, %10, %47 : vector<8x128xi32>
    %49 = arith.select %48, %46, %23 : vector<8x128xi1>, vector<8x128xf32>
    %c9 = arith.constant 9 : index
    %50 = memref.load %arg1[%c9] : memref<101xf32, #tpu.memory_space<smem>>
    %c8 = arith.constant 8 : index
    %51 = memref.load %arg1[%c8] : memref<101xf32, #tpu.memory_space<smem>>
    %52 = vector.broadcast %50 : f32 to vector<8x128xf32>
    %53 = vector.broadcast %51 : f32 to vector<8x128xf32>
    %54 = arith.select %14, %52, %53 : vector<8x128xi1>, vector<8x128xf32>
    %c11 = arith.constant 11 : index
    %55 = memref.load %arg1[%c11] : memref<101xf32, #tpu.memory_space<smem>>
    %c10 = arith.constant 10 : index
    %56 = memref.load %arg1[%c10] : memref<101xf32, #tpu.memory_space<smem>>
    %57 = vector.broadcast %55 : f32 to vector<8x128xf32>
    %58 = vector.broadcast %56 : f32 to vector<8x128xf32>
    %59 = arith.select %14, %57, %58 : vector<8x128xi1>, vector<8x128xf32>
    %c13 = arith.constant 13 : index
    %60 = memref.load %arg1[%c13] : memref<101xf32, #tpu.memory_space<smem>>
    %c12 = arith.constant 12 : index
    %61 = memref.load %arg1[%c12] : memref<101xf32, #tpu.memory_space<smem>>
    %62 = vector.broadcast %60 : f32 to vector<8x128xf32>
    %63 = vector.broadcast %61 : f32 to vector<8x128xf32>
    %64 = arith.select %14, %62, %63 : vector<8x128xi1>, vector<8x128xf32>
    %c15 = arith.constant 15 : index
    %65 = memref.load %arg1[%c15] : memref<101xf32, #tpu.memory_space<smem>>
    %c14 = arith.constant 14 : index
    %66 = memref.load %arg1[%c14] : memref<101xf32, #tpu.memory_space<smem>>
    %67 = vector.broadcast %65 : f32 to vector<8x128xf32>
    %68 = vector.broadcast %66 : f32 to vector<8x128xf32>
    %69 = arith.select %14, %67, %68 : vector<8x128xi1>, vector<8x128xf32>
    %70 = arith.select %18, %59, %54 : vector<8x128xi1>, vector<8x128xf32>
    %71 = arith.select %18, %69, %64 : vector<8x128xi1>, vector<8x128xf32>
    %72 = arith.select %22, %71, %70 : vector<8x128xi1>, vector<8x128xf32>
    %c1_i32_7 = arith.constant 1 : i32
    %73 = vector.broadcast %c1_i32_7 : i32 to vector<8x128xi32>
    %74 = arith.cmpi eq, %10, %73 : vector<8x128xi32>
    %75 = arith.select %74, %72, %49 : vector<8x128xi1>, vector<8x128xf32>
    %c17 = arith.constant 17 : index
    %76 = memref.load %arg1[%c17] : memref<101xf32, #tpu.memory_space<smem>>
    %c16 = arith.constant 16 : index
    %77 = memref.load %arg1[%c16] : memref<101xf32, #tpu.memory_space<smem>>
    %78 = vector.broadcast %76 : f32 to vector<8x128xf32>
    %79 = vector.broadcast %77 : f32 to vector<8x128xf32>
    %80 = arith.select %14, %78, %79 : vector<8x128xi1>, vector<8x128xf32>
    %c19 = arith.constant 19 : index
    %81 = memref.load %arg1[%c19] : memref<101xf32, #tpu.memory_space<smem>>
    %c18 = arith.constant 18 : index
    %82 = memref.load %arg1[%c18] : memref<101xf32, #tpu.memory_space<smem>>
    %83 = vector.broadcast %81 : f32 to vector<8x128xf32>
    %84 = vector.broadcast %82 : f32 to vector<8x128xf32>
    %85 = arith.select %14, %83, %84 : vector<8x128xi1>, vector<8x128xf32>
    %c21 = arith.constant 21 : index
    %86 = memref.load %arg1[%c21] : memref<101xf32, #tpu.memory_space<smem>>
    %c20 = arith.constant 20 : index
    %87 = memref.load %arg1[%c20] : memref<101xf32, #tpu.memory_space<smem>>
    %88 = vector.broadcast %86 : f32 to vector<8x128xf32>
    %89 = vector.broadcast %87 : f32 to vector<8x128xf32>
    %90 = arith.select %14, %88, %89 : vector<8x128xi1>, vector<8x128xf32>
    %c23 = arith.constant 23 : index
    %91 = memref.load %arg1[%c23] : memref<101xf32, #tpu.memory_space<smem>>
    %c22 = arith.constant 22 : index
    %92 = memref.load %arg1[%c22] : memref<101xf32, #tpu.memory_space<smem>>
    %93 = vector.broadcast %91 : f32 to vector<8x128xf32>
    %94 = vector.broadcast %92 : f32 to vector<8x128xf32>
    %95 = arith.select %14, %93, %94 : vector<8x128xi1>, vector<8x128xf32>
    %96 = arith.select %18, %85, %80 : vector<8x128xi1>, vector<8x128xf32>
    %97 = arith.select %18, %95, %90 : vector<8x128xi1>, vector<8x128xf32>
    %98 = arith.select %22, %97, %96 : vector<8x128xi1>, vector<8x128xf32>
    %c2_i32_8 = arith.constant 2 : i32
    %99 = vector.broadcast %c2_i32_8 : i32 to vector<8x128xi32>
    %100 = arith.cmpi eq, %10, %99 : vector<8x128xi32>
    %101 = arith.select %100, %98, %75 : vector<8x128xi1>, vector<8x128xf32>
    %c25 = arith.constant 25 : index
    %102 = memref.load %arg1[%c25] : memref<101xf32, #tpu.memory_space<smem>>
    %c24 = arith.constant 24 : index
    %103 = memref.load %arg1[%c24] : memref<101xf32, #tpu.memory_space<smem>>
    %104 = vector.broadcast %102 : f32 to vector<8x128xf32>
    %105 = vector.broadcast %103 : f32 to vector<8x128xf32>
    %106 = arith.select %14, %104, %105 : vector<8x128xi1>, vector<8x128xf32>
    %c27 = arith.constant 27 : index
    %107 = memref.load %arg1[%c27] : memref<101xf32, #tpu.memory_space<smem>>
    %c26 = arith.constant 26 : index
    %108 = memref.load %arg1[%c26] : memref<101xf32, #tpu.memory_space<smem>>
    %109 = vector.broadcast %107 : f32 to vector<8x128xf32>
    %110 = vector.broadcast %108 : f32 to vector<8x128xf32>
    %111 = arith.select %14, %109, %110 : vector<8x128xi1>, vector<8x128xf32>
    %c29 = arith.constant 29 : index
    %112 = memref.load %arg1[%c29] : memref<101xf32, #tpu.memory_space<smem>>
    %c28 = arith.constant 28 : index
    %113 = memref.load %arg1[%c28] : memref<101xf32, #tpu.memory_space<smem>>
    %114 = vector.broadcast %112 : f32 to vector<8x128xf32>
    %115 = vector.broadcast %113 : f32 to vector<8x128xf32>
    %116 = arith.select %14, %114, %115 : vector<8x128xi1>, vector<8x128xf32>
    %c31 = arith.constant 31 : index
    %117 = memref.load %arg1[%c31] : memref<101xf32, #tpu.memory_space<smem>>
    %c30 = arith.constant 30 : index
    %118 = memref.load %arg1[%c30] : memref<101xf32, #tpu.memory_space<smem>>
    %119 = vector.broadcast %117 : f32 to vector<8x128xf32>
    %120 = vector.broadcast %118 : f32 to vector<8x128xf32>
    %121 = arith.select %14, %119, %120 : vector<8x128xi1>, vector<8x128xf32>
    %122 = arith.select %18, %111, %106 : vector<8x128xi1>, vector<8x128xf32>
    %123 = arith.select %18, %121, %116 : vector<8x128xi1>, vector<8x128xf32>
    %124 = arith.select %22, %123, %122 : vector<8x128xi1>, vector<8x128xf32>
    %c3_i32_9 = arith.constant 3 : i32
    %125 = vector.broadcast %c3_i32_9 : i32 to vector<8x128xi32>
    %126 = arith.cmpi eq, %10, %125 : vector<8x128xi32>
    %127 = arith.select %126, %124, %101 : vector<8x128xi1>, vector<8x128xf32>
    %c33 = arith.constant 33 : index
    %128 = memref.load %arg1[%c33] : memref<101xf32, #tpu.memory_space<smem>>
    %c32 = arith.constant 32 : index
    %129 = memref.load %arg1[%c32] : memref<101xf32, #tpu.memory_space<smem>>
    %130 = vector.broadcast %128 : f32 to vector<8x128xf32>
    %131 = vector.broadcast %129 : f32 to vector<8x128xf32>
    %132 = arith.select %14, %130, %131 : vector<8x128xi1>, vector<8x128xf32>
    %c35 = arith.constant 35 : index
    %133 = memref.load %arg1[%c35] : memref<101xf32, #tpu.memory_space<smem>>
    %c34 = arith.constant 34 : index
    %134 = memref.load %arg1[%c34] : memref<101xf32, #tpu.memory_space<smem>>
    %135 = vector.broadcast %133 : f32 to vector<8x128xf32>
    %136 = vector.broadcast %134 : f32 to vector<8x128xf32>
    %137 = arith.select %14, %135, %136 : vector<8x128xi1>, vector<8x128xf32>
    %c37 = arith.constant 37 : index
    %138 = memref.load %arg1[%c37] : memref<101xf32, #tpu.memory_space<smem>>
    %c36 = arith.constant 36 : index
    %139 = memref.load %arg1[%c36] : memref<101xf32, #tpu.memory_space<smem>>
    %140 = vector.broadcast %138 : f32 to vector<8x128xf32>
    %141 = vector.broadcast %139 : f32 to vector<8x128xf32>
    %142 = arith.select %14, %140, %141 : vector<8x128xi1>, vector<8x128xf32>
    %c39 = arith.constant 39 : index
    %143 = memref.load %arg1[%c39] : memref<101xf32, #tpu.memory_space<smem>>
    %c38 = arith.constant 38 : index
    %144 = memref.load %arg1[%c38] : memref<101xf32, #tpu.memory_space<smem>>
    %145 = vector.broadcast %143 : f32 to vector<8x128xf32>
    %146 = vector.broadcast %144 : f32 to vector<8x128xf32>
    %147 = arith.select %14, %145, %146 : vector<8x128xi1>, vector<8x128xf32>
    %148 = arith.select %18, %137, %132 : vector<8x128xi1>, vector<8x128xf32>
    %149 = arith.select %18, %147, %142 : vector<8x128xi1>, vector<8x128xf32>
    %150 = arith.select %22, %149, %148 : vector<8x128xi1>, vector<8x128xf32>
    %c4_i32_10 = arith.constant 4 : i32
    %151 = vector.broadcast %c4_i32_10 : i32 to vector<8x128xi32>
    %152 = arith.cmpi eq, %10, %151 : vector<8x128xi32>
    %153 = arith.select %152, %150, %127 : vector<8x128xi1>, vector<8x128xf32>
    %c41 = arith.constant 41 : index
    %154 = memref.load %arg1[%c41] : memref<101xf32, #tpu.memory_space<smem>>
    %c40 = arith.constant 40 : index
    %155 = memref.load %arg1[%c40] : memref<101xf32, #tpu.memory_space<smem>>
    %156 = vector.broadcast %154 : f32 to vector<8x128xf32>
    %157 = vector.broadcast %155 : f32 to vector<8x128xf32>
    %158 = arith.select %14, %156, %157 : vector<8x128xi1>, vector<8x128xf32>
    %c43 = arith.constant 43 : index
    %159 = memref.load %arg1[%c43] : memref<101xf32, #tpu.memory_space<smem>>
    %c42 = arith.constant 42 : index
    %160 = memref.load %arg1[%c42] : memref<101xf32, #tpu.memory_space<smem>>
    %161 = vector.broadcast %159 : f32 to vector<8x128xf32>
    %162 = vector.broadcast %160 : f32 to vector<8x128xf32>
    %163 = arith.select %14, %161, %162 : vector<8x128xi1>, vector<8x128xf32>
    %c45 = arith.constant 45 : index
    %164 = memref.load %arg1[%c45] : memref<101xf32, #tpu.memory_space<smem>>
    %c44 = arith.constant 44 : index
    %165 = memref.load %arg1[%c44] : memref<101xf32, #tpu.memory_space<smem>>
    %166 = vector.broadcast %164 : f32 to vector<8x128xf32>
    %167 = vector.broadcast %165 : f32 to vector<8x128xf32>
    %168 = arith.select %14, %166, %167 : vector<8x128xi1>, vector<8x128xf32>
    %c47 = arith.constant 47 : index
    %169 = memref.load %arg1[%c47] : memref<101xf32, #tpu.memory_space<smem>>
    %c46 = arith.constant 46 : index
    %170 = memref.load %arg1[%c46] : memref<101xf32, #tpu.memory_space<smem>>
    %171 = vector.broadcast %169 : f32 to vector<8x128xf32>
    %172 = vector.broadcast %170 : f32 to vector<8x128xf32>
    %173 = arith.select %14, %171, %172 : vector<8x128xi1>, vector<8x128xf32>
    %174 = arith.select %18, %163, %158 : vector<8x128xi1>, vector<8x128xf32>
    %175 = arith.select %18, %173, %168 : vector<8x128xi1>, vector<8x128xf32>
    %176 = arith.select %22, %175, %174 : vector<8x128xi1>, vector<8x128xf32>
    %c5_i32 = arith.constant 5 : i32
    %177 = vector.broadcast %c5_i32 : i32 to vector<8x128xi32>
    %178 = arith.cmpi eq, %10, %177 : vector<8x128xi32>
    %179 = arith.select %178, %176, %153 : vector<8x128xi1>, vector<8x128xf32>
    %c49 = arith.constant 49 : index
    %180 = memref.load %arg1[%c49] : memref<101xf32, #tpu.memory_space<smem>>
    %c48 = arith.constant 48 : index
    %181 = memref.load %arg1[%c48] : memref<101xf32, #tpu.memory_space<smem>>
    %182 = vector.broadcast %180 : f32 to vector<8x128xf32>
    %183 = vector.broadcast %181 : f32 to vector<8x128xf32>
    %184 = arith.select %14, %182, %183 : vector<8x128xi1>, vector<8x128xf32>
    %c51 = arith.constant 51 : index
    %185 = memref.load %arg1[%c51] : memref<101xf32, #tpu.memory_space<smem>>
    %c50 = arith.constant 50 : index
    %186 = memref.load %arg1[%c50] : memref<101xf32, #tpu.memory_space<smem>>
    %187 = vector.broadcast %185 : f32 to vector<8x128xf32>
    %188 = vector.broadcast %186 : f32 to vector<8x128xf32>
    %189 = arith.select %14, %187, %188 : vector<8x128xi1>, vector<8x128xf32>
    %c53 = arith.constant 53 : index
    %190 = memref.load %arg1[%c53] : memref<101xf32, #tpu.memory_space<smem>>
    %c52 = arith.constant 52 : index
    %191 = memref.load %arg1[%c52] : memref<101xf32, #tpu.memory_space<smem>>
    %192 = vector.broadcast %190 : f32 to vector<8x128xf32>
    %193 = vector.broadcast %191 : f32 to vector<8x128xf32>
    %194 = arith.select %14, %192, %193 : vector<8x128xi1>, vector<8x128xf32>
    %c55 = arith.constant 55 : index
    %195 = memref.load %arg1[%c55] : memref<101xf32, #tpu.memory_space<smem>>
    %c54 = arith.constant 54 : index
    %196 = memref.load %arg1[%c54] : memref<101xf32, #tpu.memory_space<smem>>
    %197 = vector.broadcast %195 : f32 to vector<8x128xf32>
    %198 = vector.broadcast %196 : f32 to vector<8x128xf32>
    %199 = arith.select %14, %197, %198 : vector<8x128xi1>, vector<8x128xf32>
    %200 = arith.select %18, %189, %184 : vector<8x128xi1>, vector<8x128xf32>
    %201 = arith.select %18, %199, %194 : vector<8x128xi1>, vector<8x128xf32>
    %202 = arith.select %22, %201, %200 : vector<8x128xi1>, vector<8x128xf32>
    %c6_i32 = arith.constant 6 : i32
    %203 = vector.broadcast %c6_i32 : i32 to vector<8x128xi32>
    %204 = arith.cmpi eq, %10, %203 : vector<8x128xi32>
    %205 = arith.select %204, %202, %179 : vector<8x128xi1>, vector<8x128xf32>
    %c57 = arith.constant 57 : index
    %206 = memref.load %arg1[%c57] : memref<101xf32, #tpu.memory_space<smem>>
    %c56 = arith.constant 56 : index
    %207 = memref.load %arg1[%c56] : memref<101xf32, #tpu.memory_space<smem>>
    %208 = vector.broadcast %206 : f32 to vector<8x128xf32>
    %209 = vector.broadcast %207 : f32 to vector<8x128xf32>
    %210 = arith.select %14, %208, %209 : vector<8x128xi1>, vector<8x128xf32>
    %c59 = arith.constant 59 : index
    %211 = memref.load %arg1[%c59] : memref<101xf32, #tpu.memory_space<smem>>
    %c58 = arith.constant 58 : index
    %212 = memref.load %arg1[%c58] : memref<101xf32, #tpu.memory_space<smem>>
    %213 = vector.broadcast %211 : f32 to vector<8x128xf32>
    %214 = vector.broadcast %212 : f32 to vector<8x128xf32>
    %215 = arith.select %14, %213, %214 : vector<8x128xi1>, vector<8x128xf32>
    %c61 = arith.constant 61 : index
    %216 = memref.load %arg1[%c61] : memref<101xf32, #tpu.memory_space<smem>>
    %c60 = arith.constant 60 : index
    %217 = memref.load %arg1[%c60] : memref<101xf32, #tpu.memory_space<smem>>
    %218 = vector.broadcast %216 : f32 to vector<8x128xf32>
    %219 = vector.broadcast %217 : f32 to vector<8x128xf32>
    %220 = arith.select %14, %218, %219 : vector<8x128xi1>, vector<8x128xf32>
    %c63 = arith.constant 63 : index
    %221 = memref.load %arg1[%c63] : memref<101xf32, #tpu.memory_space<smem>>
    %c62 = arith.constant 62 : index
    %222 = memref.load %arg1[%c62] : memref<101xf32, #tpu.memory_space<smem>>
    %223 = vector.broadcast %221 : f32 to vector<8x128xf32>
    %224 = vector.broadcast %222 : f32 to vector<8x128xf32>
    %225 = arith.select %14, %223, %224 : vector<8x128xi1>, vector<8x128xf32>
    %226 = arith.select %18, %215, %210 : vector<8x128xi1>, vector<8x128xf32>
    %227 = arith.select %18, %225, %220 : vector<8x128xi1>, vector<8x128xf32>
    %228 = arith.select %22, %227, %226 : vector<8x128xi1>, vector<8x128xf32>
    %c7_i32 = arith.constant 7 : i32
    %229 = vector.broadcast %c7_i32 : i32 to vector<8x128xi32>
    %230 = arith.cmpi eq, %10, %229 : vector<8x128xi32>
    %231 = arith.select %230, %228, %205 : vector<8x128xi1>, vector<8x128xf32>
    %c65 = arith.constant 65 : index
    %232 = memref.load %arg1[%c65] : memref<101xf32, #tpu.memory_space<smem>>
    %c64 = arith.constant 64 : index
    %233 = memref.load %arg1[%c64] : memref<101xf32, #tpu.memory_space<smem>>
    %234 = vector.broadcast %232 : f32 to vector<8x128xf32>
    %235 = vector.broadcast %233 : f32 to vector<8x128xf32>
    %236 = arith.select %14, %234, %235 : vector<8x128xi1>, vector<8x128xf32>
    %c67 = arith.constant 67 : index
    %237 = memref.load %arg1[%c67] : memref<101xf32, #tpu.memory_space<smem>>
    %c66 = arith.constant 66 : index
    %238 = memref.load %arg1[%c66] : memref<101xf32, #tpu.memory_space<smem>>
    %239 = vector.broadcast %237 : f32 to vector<8x128xf32>
    %240 = vector.broadcast %238 : f32 to vector<8x128xf32>
    %241 = arith.select %14, %239, %240 : vector<8x128xi1>, vector<8x128xf32>
    %c69 = arith.constant 69 : index
    %242 = memref.load %arg1[%c69] : memref<101xf32, #tpu.memory_space<smem>>
    %c68 = arith.constant 68 : index
    %243 = memref.load %arg1[%c68] : memref<101xf32, #tpu.memory_space<smem>>
    %244 = vector.broadcast %242 : f32 to vector<8x128xf32>
    %245 = vector.broadcast %243 : f32 to vector<8x128xf32>
    %246 = arith.select %14, %244, %245 : vector<8x128xi1>, vector<8x128xf32>
    %c71 = arith.constant 71 : index
    %247 = memref.load %arg1[%c71] : memref<101xf32, #tpu.memory_space<smem>>
    %c70 = arith.constant 70 : index
    %248 = memref.load %arg1[%c70] : memref<101xf32, #tpu.memory_space<smem>>
    %249 = vector.broadcast %247 : f32 to vector<8x128xf32>
    %250 = vector.broadcast %248 : f32 to vector<8x128xf32>
    %251 = arith.select %14, %249, %250 : vector<8x128xi1>, vector<8x128xf32>
    %252 = arith.select %18, %241, %236 : vector<8x128xi1>, vector<8x128xf32>
    %253 = arith.select %18, %251, %246 : vector<8x128xi1>, vector<8x128xf32>
    %254 = arith.select %22, %253, %252 : vector<8x128xi1>, vector<8x128xf32>
    %c8_i32 = arith.constant 8 : i32
    %255 = vector.broadcast %c8_i32 : i32 to vector<8x128xi32>
    %256 = arith.cmpi eq, %10, %255 : vector<8x128xi32>
    %257 = arith.select %256, %254, %231 : vector<8x128xi1>, vector<8x128xf32>
    %c73 = arith.constant 73 : index
    %258 = memref.load %arg1[%c73] : memref<101xf32, #tpu.memory_space<smem>>
    %c72 = arith.constant 72 : index
    %259 = memref.load %arg1[%c72] : memref<101xf32, #tpu.memory_space<smem>>
    %260 = vector.broadcast %258 : f32 to vector<8x128xf32>
    %261 = vector.broadcast %259 : f32 to vector<8x128xf32>
    %262 = arith.select %14, %260, %261 : vector<8x128xi1>, vector<8x128xf32>
    %c75 = arith.constant 75 : index
    %263 = memref.load %arg1[%c75] : memref<101xf32, #tpu.memory_space<smem>>
    %c74 = arith.constant 74 : index
    %264 = memref.load %arg1[%c74] : memref<101xf32, #tpu.memory_space<smem>>
    %265 = vector.broadcast %263 : f32 to vector<8x128xf32>
    %266 = vector.broadcast %264 : f32 to vector<8x128xf32>
    %267 = arith.select %14, %265, %266 : vector<8x128xi1>, vector<8x128xf32>
    %c77 = arith.constant 77 : index
    %268 = memref.load %arg1[%c77] : memref<101xf32, #tpu.memory_space<smem>>
    %c76 = arith.constant 76 : index
    %269 = memref.load %arg1[%c76] : memref<101xf32, #tpu.memory_space<smem>>
    %270 = vector.broadcast %268 : f32 to vector<8x128xf32>
    %271 = vector.broadcast %269 : f32 to vector<8x128xf32>
    %272 = arith.select %14, %270, %271 : vector<8x128xi1>, vector<8x128xf32>
    %c79 = arith.constant 79 : index
    %273 = memref.load %arg1[%c79] : memref<101xf32, #tpu.memory_space<smem>>
    %c78 = arith.constant 78 : index
    %274 = memref.load %arg1[%c78] : memref<101xf32, #tpu.memory_space<smem>>
    %275 = vector.broadcast %273 : f32 to vector<8x128xf32>
    %276 = vector.broadcast %274 : f32 to vector<8x128xf32>
    %277 = arith.select %14, %275, %276 : vector<8x128xi1>, vector<8x128xf32>
    %278 = arith.select %18, %267, %262 : vector<8x128xi1>, vector<8x128xf32>
    %279 = arith.select %18, %277, %272 : vector<8x128xi1>, vector<8x128xf32>
    %280 = arith.select %22, %279, %278 : vector<8x128xi1>, vector<8x128xf32>
    %c9_i32 = arith.constant 9 : i32
    %281 = vector.broadcast %c9_i32 : i32 to vector<8x128xi32>
    %282 = arith.cmpi eq, %10, %281 : vector<8x128xi32>
    %283 = arith.select %282, %280, %257 : vector<8x128xi1>, vector<8x128xf32>
    %c81 = arith.constant 81 : index
    %284 = memref.load %arg1[%c81] : memref<101xf32, #tpu.memory_space<smem>>
    %c80 = arith.constant 80 : index
    %285 = memref.load %arg1[%c80] : memref<101xf32, #tpu.memory_space<smem>>
    %286 = vector.broadcast %284 : f32 to vector<8x128xf32>
    %287 = vector.broadcast %285 : f32 to vector<8x128xf32>
    %288 = arith.select %14, %286, %287 : vector<8x128xi1>, vector<8x128xf32>
    %c83 = arith.constant 83 : index
    %289 = memref.load %arg1[%c83] : memref<101xf32, #tpu.memory_space<smem>>
    %c82 = arith.constant 82 : index
    %290 = memref.load %arg1[%c82] : memref<101xf32, #tpu.memory_space<smem>>
    %291 = vector.broadcast %289 : f32 to vector<8x128xf32>
    %292 = vector.broadcast %290 : f32 to vector<8x128xf32>
    %293 = arith.select %14, %291, %292 : vector<8x128xi1>, vector<8x128xf32>
    %c85 = arith.constant 85 : index
    %294 = memref.load %arg1[%c85] : memref<101xf32, #tpu.memory_space<smem>>
    %c84 = arith.constant 84 : index
    %295 = memref.load %arg1[%c84] : memref<101xf32, #tpu.memory_space<smem>>
    %296 = vector.broadcast %294 : f32 to vector<8x128xf32>
    %297 = vector.broadcast %295 : f32 to vector<8x128xf32>
    %298 = arith.select %14, %296, %297 : vector<8x128xi1>, vector<8x128xf32>
    %c87 = arith.constant 87 : index
    %299 = memref.load %arg1[%c87] : memref<101xf32, #tpu.memory_space<smem>>
    %c86 = arith.constant 86 : index
    %300 = memref.load %arg1[%c86] : memref<101xf32, #tpu.memory_space<smem>>
    %301 = vector.broadcast %299 : f32 to vector<8x128xf32>
    %302 = vector.broadcast %300 : f32 to vector<8x128xf32>
    %303 = arith.select %14, %301, %302 : vector<8x128xi1>, vector<8x128xf32>
    %304 = arith.select %18, %293, %288 : vector<8x128xi1>, vector<8x128xf32>
    %305 = arith.select %18, %303, %298 : vector<8x128xi1>, vector<8x128xf32>
    %306 = arith.select %22, %305, %304 : vector<8x128xi1>, vector<8x128xf32>
    %c10_i32 = arith.constant 10 : i32
    %307 = vector.broadcast %c10_i32 : i32 to vector<8x128xi32>
    %308 = arith.cmpi eq, %10, %307 : vector<8x128xi32>
    %309 = arith.select %308, %306, %283 : vector<8x128xi1>, vector<8x128xf32>
    %c89 = arith.constant 89 : index
    %310 = memref.load %arg1[%c89] : memref<101xf32, #tpu.memory_space<smem>>
    %c88 = arith.constant 88 : index
    %311 = memref.load %arg1[%c88] : memref<101xf32, #tpu.memory_space<smem>>
    %312 = vector.broadcast %310 : f32 to vector<8x128xf32>
    %313 = vector.broadcast %311 : f32 to vector<8x128xf32>
    %314 = arith.select %14, %312, %313 : vector<8x128xi1>, vector<8x128xf32>
    %c91 = arith.constant 91 : index
    %315 = memref.load %arg1[%c91] : memref<101xf32, #tpu.memory_space<smem>>
    %c90 = arith.constant 90 : index
    %316 = memref.load %arg1[%c90] : memref<101xf32, #tpu.memory_space<smem>>
    %317 = vector.broadcast %315 : f32 to vector<8x128xf32>
    %318 = vector.broadcast %316 : f32 to vector<8x128xf32>
    %319 = arith.select %14, %317, %318 : vector<8x128xi1>, vector<8x128xf32>
    %c93 = arith.constant 93 : index
    %320 = memref.load %arg1[%c93] : memref<101xf32, #tpu.memory_space<smem>>
    %c92 = arith.constant 92 : index
    %321 = memref.load %arg1[%c92] : memref<101xf32, #tpu.memory_space<smem>>
    %322 = vector.broadcast %320 : f32 to vector<8x128xf32>
    %323 = vector.broadcast %321 : f32 to vector<8x128xf32>
    %324 = arith.select %14, %322, %323 : vector<8x128xi1>, vector<8x128xf32>
    %c95 = arith.constant 95 : index
    %325 = memref.load %arg1[%c95] : memref<101xf32, #tpu.memory_space<smem>>
    %c94 = arith.constant 94 : index
    %326 = memref.load %arg1[%c94] : memref<101xf32, #tpu.memory_space<smem>>
    %327 = vector.broadcast %325 : f32 to vector<8x128xf32>
    %328 = vector.broadcast %326 : f32 to vector<8x128xf32>
    %329 = arith.select %14, %327, %328 : vector<8x128xi1>, vector<8x128xf32>
    %330 = arith.select %18, %319, %314 : vector<8x128xi1>, vector<8x128xf32>
    %331 = arith.select %18, %329, %324 : vector<8x128xi1>, vector<8x128xf32>
    %332 = arith.select %22, %331, %330 : vector<8x128xi1>, vector<8x128xf32>
    %c11_i32 = arith.constant 11 : i32
    %333 = vector.broadcast %c11_i32 : i32 to vector<8x128xi32>
    %334 = arith.cmpi eq, %10, %333 : vector<8x128xi32>
    %335 = arith.select %334, %332, %309 : vector<8x128xi1>, vector<8x128xf32>
    %c97 = arith.constant 97 : index
    %336 = memref.load %arg1[%c97] : memref<101xf32, #tpu.memory_space<smem>>
    %c96 = arith.constant 96 : index
    %337 = memref.load %arg1[%c96] : memref<101xf32, #tpu.memory_space<smem>>
    %338 = vector.broadcast %336 : f32 to vector<8x128xf32>
    %339 = vector.broadcast %337 : f32 to vector<8x128xf32>
    %340 = arith.select %14, %338, %339 : vector<8x128xi1>, vector<8x128xf32>
    %c99 = arith.constant 99 : index
    %341 = memref.load %arg1[%c99] : memref<101xf32, #tpu.memory_space<smem>>
    %c98 = arith.constant 98 : index
    %342 = memref.load %arg1[%c98] : memref<101xf32, #tpu.memory_space<smem>>
    %343 = vector.broadcast %341 : f32 to vector<8x128xf32>
    %344 = vector.broadcast %342 : f32 to vector<8x128xf32>
    %345 = arith.select %14, %343, %344 : vector<8x128xi1>, vector<8x128xf32>
    %c100 = arith.constant 100 : index
    %346 = memref.load %arg1[%c100] : memref<101xf32, #tpu.memory_space<smem>>
    %c100_11 = arith.constant 100 : index
    %347 = memref.load %arg1[%c100_11] : memref<101xf32, #tpu.memory_space<smem>>
    %348 = vector.broadcast %346 : f32 to vector<8x128xf32>
    %349 = vector.broadcast %347 : f32 to vector<8x128xf32>
    %350 = arith.select %14, %348, %349 : vector<8x128xi1>, vector<8x128xf32>
    %c100_12 = arith.constant 100 : index
    %351 = memref.load %arg1[%c100_12] : memref<101xf32, #tpu.memory_space<smem>>
    %c100_13 = arith.constant 100 : index
    %352 = memref.load %arg1[%c100_13] : memref<101xf32, #tpu.memory_space<smem>>
    %353 = vector.broadcast %351 : f32 to vector<8x128xf32>
    %354 = vector.broadcast %352 : f32 to vector<8x128xf32>
    %355 = arith.select %14, %353, %354 : vector<8x128xi1>, vector<8x128xf32>
    %356 = arith.select %18, %345, %340 : vector<8x128xi1>, vector<8x128xf32>
    %357 = arith.select %18, %355, %350 : vector<8x128xi1>, vector<8x128xf32>
    %358 = arith.select %22, %357, %356 : vector<8x128xi1>, vector<8x128xf32>
    %c12_i32 = arith.constant 12 : i32
    %359 = vector.broadcast %c12_i32 : i32 to vector<8x128xi32>
    %360 = arith.cmpi eq, %10, %359 : vector<8x128xi32>
    %361 = arith.select %360, %358, %335 : vector<8x128xi1>, vector<8x128xf32>
    %c0_14 = arith.constant 0 : index
    %c0_15 = arith.constant 0 : index
    %362 = vector.load %arg3[%c0_14, %c0_15] : memref<8x128xf32, #tpu.memory_space<vmem>>, vector<8x128xf32>
    tpu.vector_store %arg3[%c0_14, %c0_15], %361 {strides = array<i32>} : memref<8x128xf32, #tpu.memory_space<vmem>>, vector<8x128xf32>,
    return
  }
  func.func @transform_0(%arg0: i32) -> i32 {
    %c0_i32 = arith.constant 0 : i32
    %c0_i32_0 = arith.constant 0 : i32
    return %c0_i32 : i32
  }
  func.func @transform_1(%arg0: i32) -> (i32, i32) {
    %c0_i32 = arith.constant 0 : i32
    %c0_i32_0 = arith.constant 0 : i32
    return %arg0, %c0_i32 : i32, i32
  }
  func.func @transform_2(%arg0: i32) -> (i32, i32) {
    %c0_i32 = arith.constant 0 : i32
    %c0_i32_0 = arith.constant 0 : i32
    return %arg0, %c0_i32 : i32, i32
  }
}

</mosaic_0001>

<bundles_post_ra>
// kernel: tpu_custom_call.1
= control target key start
LH: loop header
LB: loop body
LE: loop exit
PB: predicated region body
PF: predicated region fallthrough
CT: control target
= control target key end

     0   :  { %s1084_s0 = inlined_call_operand.hbm [shape: f32[101], index: 0, kind: input, shape index: {}]   ;;  %s1085_s1 = inlined_call_operand.hbm [shape: f32[8,128], index: 1, kind: input, shape index: {}]   ;;  %s1086_s2 = inlined_call_operand.hbm [shape: f32[8,128], index: 2, kind: output, shape index: {}]  }
   0x1   :  { %1087 = sst [smem:[#allocation22_spill]] %s1086_s2 }
   0x2   :  { %7 = vsyncpa [#allocation5], 0 }
   0x3   :  { %8 = vsyncpa [#allocation3], 0 }
   0x4   :  { %9 = vsyncpa [#allocation4], 0  ;;  %s15_s11 = sshll.u32 %s1084_s0, 4  ;;  %s24_s14 = sshll.u32 %s1085_s1, 4  ;;  %s16_s11 = int_to_ptr.hbm [resolvable:$true] %s15_s11  ;;  %s25_s14 = int_to_ptr.hbm [resolvable:$true] %s24_s14 }
   0x5   :  { %s560_s15 = smov [#allocation2]   ;;  %s561_s16 = smov [#allocation6]  }
   0x6   :  { %18 = dma.hbm_to_smem %s16_s11, 16, %s560_s15, [#allocation5]  }
   0x7   :  { %s26_s17 = sshll.u32 %s561_s16, 4  ;;  %s27_s17 = int_to_ptr.vmem [resolvable:$true] %s26_s17 }
   0x8   :  { %29 = dma.hbm_to_vmem [thread:$0]  %s25_s14, 128, %s27_s17, [#allocation3]  }
   0x9   :  { %554 = dma.done.wait [#allocation5], 16  }
   0xa   :  { %555 = vsyncadd [#allocation5], 4294967280 }
   0xb   :  { %556 = dma.done.wait [#allocation3], 128  }
   0xc   :  { %557 = vsyncadd [#allocation3], 4294967168 }
   0xd   :  { %38 = sfence }
   0xe   :  { %s584_s18 = sld [smem:[#allocation2 + $0x1]]  ;;  %v39_v0 = vld [vmem:[#allocation6] sm:$0xff] }
   0xf   :  { %s586_s0 = sld [smem:[#allocation2]]  ;;  %v40_v1 = vmul.f32 100.0, %v39_v0 }
  0x10   :  { %s588_s19 = sld [smem:[#allocation2 + $0x3]] }
  0x11   :  { %s590_s20 = sld [smem:[#allocation2 + $0x2]]  ;;  %v490_v2 = vcvt.f32.s32 %v40_v1 }
  0x12   :  { %s592_s1 = sld [smem:[#allocation2 + $0x5]] }
  0x13   :  { %s594_s21 = sld [smem:[#allocation2 + $0x4]]  ;;  %vm42_vm0 = vcmp.gt.s32.totalorder %v490_v2, 0 }
  0x14   :  { %s596_s22 = sld [smem:[#allocation2 + $0x7]]  ;;  %v43_v3 = vsel %vm42_vm0, %v490_v2, 0  ;;  %v55_v7 = vstv %s584_s18 }
  0x15   :  { %s598_s23 = sld [smem:[#allocation2 + $0x6]]  ;;  %vm44_vm1 = vcmp.lt.s32.totalorder %v43_v3, 100  ;;  %v56_v8 = vstv %s586_s0 }
  0x16   :  { %s600_s24 = sld [smem:[#allocation2 + $0x9]]  ;;  %v45_v4 = vsel %vm44_vm1, %v43_v3, 100  ;;  %v60_v9 = vstv %s588_s19 }
  0x17   :  { %s602_s25 = sld [smem:[#allocation2 + $0x8]]  ;;  %v47_v5 = vand.u32 1, %v45_v4  ;;  %v49_v6 = vand.u32 2, %v45_v4  ;;  %v61_v10 = vstv %s590_s20  ;;  %v51_v17 = vand.u32 4, %v45_v4 }
  0x18   :  { %s604_s26 = sld [smem:[#allocation2 + $0xb]]  ;;  %v65_v11 = vstv %s592_s1  ;;  %v714_v30 = vshra.s32 %v45_v4, 3 }
  0x19   :  { %s606_s27 = sld [smem:[#allocation2 + $0xa]]  ;;  %vm673_vm2 = vcmp.ne.s32.totalorder %v47_v5, 0  ;;  %v66_v13 = vstv %s594_s21  ;;  %vm684_vm3 = vcmp.ne.s32.totalorder %v49_v6, 0  ;;  %vm716_vm4 = vcmp.ne.s32.totalorder %v51_v17, 0 }
  0x1a   :  { %s608_s28 = sld [smem:[#allocation2 + $0xd]]  ;;  %v70_v14 = vstv %s596_s22  ;;  %v57_v18 = vsel %vm673_vm2, %v55_v7, %v56_v8  ;;  %v62_v19 = vsel %vm673_vm2, %v60_v9, %v61_v10  ;;  %v67_v20 = vsel %vm673_vm2, %v65_v11, %v66_v13 }
  0x1b   :  { %s610_s29 = sld [smem:[#allocation2 + $0xc]]  ;;  %v71_v15 = vstv %s598_s23  ;;  %v73_v32 = vsel %vm684_vm3, %v62_v19, %v57_v18  ;;  %vm76_vm5 = vcmp.eq.s32.totalorder %v714_v30, 0  ;;  %vm101_vm6 = vcmp.eq.s32.totalorder %v714_v30, 1 }
  0x1c   :  { %s612_s30 = sld [smem:[#allocation2 + $0xf]]  ;;  %v72_v21 = vsel %vm673_vm2, %v70_v14, %v71_v15  ;;  %v80_v22 = vstv %s600_s24  ;;  %vm126_vm7 = vcmp.eq.s32.totalorder %v714_v30, 2  ;;  %vm151_vm8 = vcmp.eq.s32.totalorder %v714_v30, 3 }
  0x1d   :  { %s614_s3 = sld [smem:[#allocation2 + $0xe]]  ;;  %v81_v23 = vstv %s602_s25  ;;  %v74_v33 = vsel %vm684_vm3, %v72_v21, %v67_v20  ;;  %vm176_vm9 = vcmp.eq.s32.totalorder %v714_v30, 4  ;;  %vm201_vm10 = vcmp.eq.s32.totalorder %v714_v30, 5 }
  0x1e   :  { %s616_s4 = sld [smem:[#allocation2 + $0x11]]  ;;  %v85_v24 = vstv %s604_s26  ;;  %v82_v34 = vsel %vm673_vm2, %v80_v22, %v81_v23  ;;  %v75_v46 = vsel %vm716_vm4, %v74_v33, %v73_v32  ;;  %vm226_vm11 = vcmp.eq.s32.totalorder %v714_v30, 6 }
  0x1f   :  { %s618_s5 = sld [smem:[#allocation2 + $0x10]]  ;;  %v86_v25 = vstv %s606_s27  ;;  %v77_v61 = vsel %vm76_vm5, %v75_v46, 0.0  ;;  %vm251_vm12 = vcmp.eq.s32.totalorder %v714_v30, 7  ;;  %vm276_vm13 = vcmp.eq.s32.totalorder %v714_v30, 8 }
  0x20   :  { %s620_s6 = sld [smem:[#allocation2 + $0x13]]  ;;  %v90_v26 = vstv %s608_s28  ;;  %v87_v35 = vsel %vm673_vm2, %v85_v24, %v86_v25  ;;  %vm301_vm14 = vcmp.eq.s32.totalorder %v714_v30, 9  ;;  %vm326_vm15 = vcmp.eq.s32.totalorder %v714_v30, 10 }
  0x21   :  { %s622_s7 = sld [smem:[#allocation2 + $0x12]]  ;;  %v91_v27 = vstv %s610_s29  ;;  %v98_v47 = vsel %vm684_vm3, %v87_v35, %v82_v34  ;;  %vm351_vm0 = vcmp.eq.s32.totalorder %v714_v30, 11  ;;  %vm367_vm1 = vcmp.eq.s32.totalorder %v714_v30, 12 }
  0x22   :  { %s624_s8 = sld [smem:[#allocation2 + $0x15]]  ;;  %v95_v28 = vstv %s612_s30  ;;  %v92_v36 = vsel %vm673_vm2, %v90_v26, %v91_v27 }
  0x23   :  { %s626_s9 = sld [smem:[#allocation2 + $0x14]]  ;;  %v96_v29 = vstv %s614_s3 }
  0x24   :  { %s628_s10 = sld [smem:[#allocation2 + $0x17]]  ;;  %v97_v37 = vsel %vm673_vm2, %v95_v28, %v96_v29  ;;  %v105_v38 = vstv %s616_s4 }
  0x25   :  { %s630_s11 = sld [smem:[#allocation2 + $0x16]]  ;;  %v106_v39 = vstv %s618_s5  ;;  %v99_v48 = vsel %vm684_vm3, %v97_v37, %v92_v36 }
  0x26   :  { %s632_s12 = sld [smem:[#allocation2 + $0x19]]  ;;  %v110_v40 = vstv %s620_s6  ;;  %v107_v49 = vsel %vm673_vm2, %v105_v38, %v106_v39  ;;  %v100_v62 = vsel %vm716_vm4, %v99_v48, %v98_v47 }
  0x27   :  { %s634_s13 = sld [smem:[#allocation2 + $0x18]]  ;;  %v111_v41 = vstv %s622_s7  ;;  %v102_v14 = vsel %vm101_vm6, %v100_v62, %v77_v61 }
  0x28   :  { %s636_s14 = sld [smem:[#allocation2 + $0x1b]]  ;;  %v115_v42 = vstv %s624_s8  ;;  %v112_v50 = vsel %vm673_vm2, %v110_v40, %v111_v41 }
  0x29   :  { %s638_s15 = sld [smem:[#allocation2 + $0x1a]]  ;;  %v116_v43 = vstv %s626_s9  ;;  %v123_v63 = vsel %vm684_vm3, %v112_v50, %v107_v49 }
  0x2a   :  { %1088 = sst [smem:[#allocation11_spill]] %s628_s10  ;;  %v117_v51 = vsel %vm673_vm2, %v115_v42, %v116_v43 }
  0x2b   :  { %s640_s16 = sld [smem:[#allocation2 + $0x1d]]  ;;  %v121_v45 = vstv %s630_s11 }
  0x2c   :  { %1089 = sst [smem:[#allocation12_spill]] %s632_s12 }
  0x2d   :  { %1090 = sst [smem:[#allocation13_spill]] %s634_s13 }
  0x2e   :  { %1091 = sst [smem:[#allocation14_spill]] %s636_s14 }
  0x2f   :  { %1092 = sst [smem:[#allocation15_spill]] %s638_s15 }
  0x30   :  { %s642_s17 = sld [smem:[#allocation2 + $0x1c]] }
  0x31   :  { %1093 = sst [smem:[#allocation16_spill]] %s640_s16 }
  0x32   :  { %s644_s2 = sld [smem:[#allocation2 + $0x1f]] }
  0x33   :  { %s646_s10 = sld [smem:[#allocation2 + $0x1e]] }
  0x34   :  { %s648_s13 = sld [smem:[#allocation2 + $0x21]] }
  0x35   :  { %s650_s14 = sld [smem:[#allocation2 + $0x20]] }
  0x36   :  { %1094 = sst [smem:[#allocation17_spill]] %s642_s17 }
  0x37   :  { %s652_s15 = sld [smem:[#allocation2 + $0x23]] }
  0x38   :  { %1095 = sst [smem:[#allocation18_spill]] %s644_s2 }
  0x39   :  { %1096 = sst [smem:[#allocation19_spill]] %s646_s10 }
  0x3a   :  { %s654_s16 = sld [smem:[#allocation2 + $0x22]]  ;;  %v155_v5 = vstv %s648_s13 }
  0x3b   :  { %1097 = sst [smem:[#allocation20_spill]] %s650_s14 }
  0x3c   :  { %s656_s17 = sld [smem:[#allocation2 + $0x25]] }
  0x3d   :  { %s658_s2 = sld [smem:[#allocation2 + $0x24]]  ;;  %v160_v7 = vstv %s652_s15 }
  0x3e   :  { %s660_s10 = sld [smem:[#allocation2 + $0x27]] }
  0x3f   :  { %s662_s12 = sld [smem:[#allocation2 + $0x26]] }
  0x40   :  { %1098 = sst [smem:[#allocation21_spill]] %s654_s16 }
  0x41   :  { %s665_s14 = sld [smem:[#allocation2 + $0x29]] }
  0x42   :  { %s671_s16 = sld [smem:[#allocation2 + $0x28]]  ;;  %v165_v9 = vstv %s656_s17 }
  0x43   :  { %s680_s18 = sld [smem:[#allocation2 + $0x2b]]  ;;  %v166_v10 = vstv %s658_s2 }
  0x44   :  { %s682_s0 = sld [smem:[#allocation2 + $0x2a]]  ;;  %v170_v11 = vstv %s660_s10  ;;  %v167_v21 = vsel %vm673_vm2, %v165_v9, %v166_v10 }
  0x45   :  { %s688_s19 = sld [smem:[#allocation2 + $0x2d]]  ;;  %v171_v13 = vstv %s662_s12 }
  0x46   :  { %s698_s20 = sld [smem:[#allocation2 + $0x2c]]  ;;  %v172_v22 = vsel %vm673_vm2, %v170_v11, %v171_v13 }
  0x47   :  { %s704_s1 = sld [smem:[#allocation2 + $0x2f]]  ;;  %v180_v23 = vstv %s665_s14  ;;  %v174_v36 = vsel %vm684_vm3, %v172_v22, %v167_v21 }
  0x48   :  { %s710_s21 = sld [smem:[#allocation2 + $0x2e]]  ;;  %v181_v24 = vstv %s671_s16 }
  0x49   :  { %s712_s22 = sld [smem:[#allocation2 + $0x31]]  ;;  %v185_v25 = vstv %s680_s18  ;;  %v182_v37 = vsel %vm673_vm2, %v180_v23, %v181_v24 }
  0x4a   :  { %s1105_s23 = sld [smem:[#allocation11_spill]]  ;;  %v186_v26 = vstv %s682_s0 }
  0x4b   :  { %s724_s24 = sld [smem:[#allocation2 + $0x30]]  ;;  %v190_v27 = vstv %s688_s19  ;;  %v187_v38 = vsel %vm673_vm2, %v185_v25, %v186_v26 }
  0x4c   :  { %s734_s25 = sld [smem:[#allocation2 + $0x33]]  ;;  %v191_v28 = vstv %s698_s20 }
  0x4d   :  { %s740_s26 = sld [smem:[#allocation2 + $0x32]]  ;;  %v195_v29 = vstv %s704_s1  ;;  %v192_v39 = vsel %vm673_vm2, %v190_v27, %v191_v28 }
  0x4e   :  { %s1107_s27 = sld [smem:[#allocation12_spill]]  ;;  %v196_v32 = vstv %s710_s21 }
  0x4f   :  { %s1108_s28 = sld [smem:[#allocation13_spill]]  ;;  %v197_v40 = vsel %vm673_vm2, %v195_v29, %v196_v32  ;;  %v205_v41 = vstv %s712_s22 }
  0x50   :  { %v120_v44 = vstv %s1105_s23  ;;  %s1109_s29 = sld [smem:[#allocation14_spill]] }
  0x51   :  { %1106 = sst [smem:[#allocation11_spill]] %s724_s24  ;;  %v122_v52 = vsel %vm673_vm2, %v120_v44, %v121_v45 }
  0x52   :  { %s1110_s30 = sld [smem:[#allocation15_spill]]  ;;  %v124_v0 = vsel %vm684_vm3, %v122_v52, %v117_v51  ;;  %v210_v43 = vstv %s734_s25  ;;  %v198_v51 = vsel %vm684_vm3, %v187_v38, %v182_v37  ;;  %v199_v52 = vsel %vm684_vm3, %v197_v40, %v192_v39 }
  0x53   :  { %s746_s3 = sld [smem:[#allocation2 + $0x35]]  ;;  %v125_v15 = vsel %vm716_vm4, %v124_v0, %v123_v63  ;;  %v211_v44 = vstv %s740_s26 }
  0x54   :  { %s748_s24 = sld [smem:[#allocation2 + $0x34]]  ;;  %v130_v53 = vstv %s1107_s27  ;;  %v127_v33 = vsel %vm126_vm7, %v125_v15, %v102_v14 }
  0x55   :  { %s1113_s4 = sld [smem:[#allocation16_spill]]  ;;  %v131_v54 = vstv %s1108_s28 }
  0x56   :  { %s1114_s5 = sld [smem:[#allocation17_spill]]  ;;  %v135_v55 = vstv %s1109_s29  ;;  %v132_v1 = vsel %vm673_vm2, %v130_v53, %v131_v54  ;;  %v212_v54 = vsel %vm673_vm2, %v210_v43, %v211_v44 }
  0x57   :  { %s1115_s6 = sld [smem:[#allocation18_spill]] }
  0x58   :  { %s1116_s7 = sld [smem:[#allocation19_spill]]  ;;  %v136_v56 = vstv %s1110_s30 }
  0x59   :  { %1111 = sst [smem:[#allocation12_spill]] %s746_s3  ;;  %v137_v2 = vsel %vm673_vm2, %v135_v55, %v136_v56 }
  0x5a   :  { %1112 = sst [smem:[#allocation13_spill]] %s748_s24  ;;  %v148_v17 = vsel %vm684_vm3, %v137_v2, %v132_v1  ;;  %v200_v2 = vsel %vm716_vm4, %v199_v52, %v198_v51 }
  0x5b   :  { %s757_s8 = sld [smem:[#allocation2 + $0x37]]  ;;  %v140_v57 = vstv %s1113_s4 }
  0x5c   :  { %s767_s9 = sld [smem:[#allocation2 + $0x36]]  ;;  %v141_v58 = vstv %s1114_s5 }
  0x5d   :  { %s773_s11 = sld [smem:[#allocation2 + $0x39]]  ;;  %v145_v59 = vstv %s1115_s6  ;;  %v142_v3 = vsel %vm673_vm2, %v140_v57, %v141_v58 }
  0x5e   :  { %s1118_s23 = sld [smem:[#allocation20_spill]]  ;;  %v146_v60 = vstv %s1116_s7 }
  0x5f   :  { %s1119_s24 = sld [smem:[#allocation21_spill]]  ;;  %v147_v4 = vsel %vm673_vm2, %v145_v59, %v146_v60 }
  0x60   :  { %s782_s3 = sld [smem:[#allocation2 + $0x3b]]  ;;  %v149_v18 = vsel %vm684_vm3, %v147_v4, %v142_v3 }
  0x61   :  { %1117 = sst [smem:[#allocation14_spill]] %s757_s8  ;;  %v150_v34 = vsel %vm716_vm4, %v149_v18, %v148_v17 }
  0x62   :  { %s779_s8 = sld [smem:[#allocation2 + $0x38]]  ;;  %v221_v48 = vstv %s767_s9  ;;  %v152_v49 = vsel %vm151_vm8, %v150_v34, %v127_v33 }
  0x63   :  { %s792_s27 = sld [smem:[#allocation2 + $0x3a]]  ;;  %v230_v57 = vstv %s773_s11 }
  0x64   :  { %s802_s28 = sld [smem:[#allocation2 + $0x3d]]  ;;  %v156_v6 = vstv %s1118_s23 }
  0x65   :  { %v161_v8 = vstv %s1119_s24  ;;  %s808_s29 = sld [smem:[#allocation2 + $0x3c]]  ;;  %v157_v19 = vsel %vm673_vm2, %v155_v5, %v156_v6 }
  0x66   :  { %s814_s30 = sld [smem:[#allocation2 + $0x3f]]  ;;  %v162_v20 = vsel %vm673_vm2, %v160_v7, %v161_v8  ;;  %v235_v59 = vstv %s782_s3 }
  0x67   :  { %s817_s4 = sld [smem:[#allocation2 + $0x3e]]  ;;  %v173_v35 = vsel %vm684_vm3, %v162_v20, %v157_v19 }
  0x68   :  { %s827_s2 = sld [smem:[#allocation2 + $0x41]]  ;;  %v175_v50 = vsel %vm716_vm4, %v174_v36, %v173_v35  ;;  %v231_v58 = vstv %s779_s8 }
  0x69   :  { %s837_s10 = sld [smem:[#allocation2 + $0x40]]  ;;  %v236_v60 = vstv %s792_s27  ;;  %v177_v1 = vsel %vm176_vm9, %v175_v50, %v152_v49  ;;  %v232_v5 = vsel %vm673_vm2, %v230_v57, %v231_v58 }
  0x6a   :  { %s843_s12 = sld [smem:[#allocation2 + $0x43]]  ;;  %v240_v61 = vstv %s802_s28  ;;  %v237_v6 = vsel %vm673_vm2, %v235_v59, %v236_v60  ;;  %v202_v19 = vsel %vm201_vm10, %v200_v2, %v177_v1 }
  0x6b   :  { %s1120_s13 = sld [smem:[#allocation11_spill]]  ;;  %v241_v62 = vstv %s808_s29  ;;  %v248_v21 = vsel %vm684_vm3, %v237_v6, %v232_v5 }
  0x6c   :  { %s849_s15 = sld [smem:[#allocation2 + $0x42]]  ;;  %v245_v63 = vstv %s814_s30  ;;  %v242_v7 = vsel %vm673_vm2, %v240_v61, %v241_v62 }
  0x6d   :  { %s852_s17 = sld [smem:[#allocation2 + $0x45]]  ;;  %v246_v0 = vstv %s817_s4 }
  0x6e   :  { %s1121_s14 = sld [smem:[#allocation12_spill]]  ;;  %v247_v8 = vsel %vm673_vm2, %v245_v63, %v246_v0  ;;  %v255_v9 = vstv %s827_s2 }
  0x6f   :  { %s1122_s16 = sld [smem:[#allocation13_spill]]  ;;  %v256_v10 = vstv %s837_s10  ;;  %v249_v22 = vsel %vm684_vm3, %v247_v8, %v242_v7 }
  0x70   :  { %s1123_s18 = sld [smem:[#allocation14_spill]]  ;;  %v260_v11 = vstv %s843_s12  ;;  %v257_v23 = vsel %vm673_vm2, %v255_v9, %v256_v10  ;;  %v250_v38 = vsel %vm716_vm4, %v249_v22, %v248_v21 }
  0x71   :  { %s862_s0 = sld [smem:[#allocation2 + $0x44]]  ;;  %v206_v42 = vstv %s1120_s13 }
  0x72   :  { %s872_s19 = sld [smem:[#allocation2 + $0x47]]  ;;  %v207_v53 = vsel %vm673_vm2, %v205_v41, %v206_v42  ;;  %v261_v13 = vstv %s849_s15 }
  0x73   :  { %s878_s20 = sld [smem:[#allocation2 + $0x46]]  ;;  %v223_v3 = vsel %vm684_vm3, %v212_v54, %v207_v53  ;;  %v265_v14 = vstv %s852_s17  ;;  %v262_v24 = vsel %vm673_vm2, %v260_v11, %v261_v13 }
  0x74   :  { %v215_v45 = vstv %s1121_s14  ;;  %s884_s1 = sld [smem:[#allocation2 + $0x49]]  ;;  %v273_v39 = vsel %vm684_vm3, %v262_v24, %v257_v23 }
  0x75   :  { %v216_v46 = vstv %s1122_s16  ;;  %s887_s21 = sld [smem:[#allocation2 + $0x48]] }
  0x76   :  { %v220_v47 = vstv %s1123_s18  ;;  %s897_s22 = sld [smem:[#allocation2 + $0x4b]]  ;;  %v217_v55 = vsel %vm673_vm2, %v215_v45, %v216_v46 }
  0x77   :  { %v222_v56 = vsel %vm673_vm2, %v220_v47, %v221_v48  ;;  %s907_s24 = sld [smem:[#allocation2 + $0x4a]]  ;;  %v266_v15 = vstv %s862_s0 }
  0x78   :  { %s913_s25 = sld [smem:[#allocation2 + $0x4d]]  ;;  %v224_v4 = vsel %vm684_vm3, %v222_v56, %v217_v55  ;;  %v270_v17 = vstv %s872_s19  ;;  %v267_v25 = vsel %vm673_vm2, %v265_v14, %v266_v15  ;;  %s562_s19 = smov [#allocation7]  }
  0x79   :  { %s919_s26 = sld [smem:[#allocation2 + $0x4c]]  ;;  %v271_v18 = vstv %s878_s20  ;;  %v225_v20 = vsel %vm716_vm4, %v224_v4, %v223_v3  ;;  %s375_s20 = sshll.u32 %s562_s19, 4  ;;  %s376_s20 = int_to_ptr.vmem [resolvable:$true] %s375_s20 }
  0x7a   :  { %s922_s5 = sld [smem:[#allocation2 + $0x4f]]  ;;  %v272_v26 = vsel %vm673_vm2, %v270_v17, %v271_v18  ;;  %v280_v27 = vstv %s884_s1  ;;  %v227_v37 = vsel %vm226_vm11, %v225_v20, %v202_v19 }
  0x7b   :  { %s932_s3 = sld [smem:[#allocation2 + $0x4e]]  ;;  %v281_v28 = vstv %s887_s21  ;;  %v274_v40 = vsel %vm684_vm3, %v272_v26, %v267_v25  ;;  %v252_v51 = vsel %vm251_vm12, %v250_v38, %v227_v37 }
  0x7c   :  { %s942_s6 = sld [smem:[#allocation2 + $0x51]]  ;;  %v285_v29 = vstv %s897_s22  ;;  %v282_v41 = vsel %vm673_vm2, %v280_v27, %v281_v28  ;;  %v275_v53 = vsel %vm716_vm4, %v274_v40, %v273_v39 }
  0x7d   :  { %s948_s7 = sld [smem:[#allocation2 + $0x50]]  ;;  %v286_v32 = vstv %s907_s24  ;;  %v277_v63 = vsel %vm276_vm13, %v275_v53, %v252_v51 }
  0x7e   :  { %s954_s8 = sld [smem:[#allocation2 + $0x53]]  ;;  %v290_v33 = vstv %s913_s25  ;;  %v287_v42 = vsel %vm673_vm2, %v285_v29, %v286_v32 }
  0x7f   :  { %s957_s9 = sld [smem:[#allocation2 + $0x52]]  ;;  %v291_v34 = vstv %s919_s26  ;;  %v298_v54 = vsel %vm684_vm3, %v287_v42, %v282_v41 }
  0x80   :  { %s967_s11 = sld [smem:[#allocation2 + $0x55]]  ;;  %v295_v35 = vstv %s922_s5  ;;  %v292_v43 = vsel %vm673_vm2, %v290_v33, %v291_v34 }
  0x81   :  { %s977_s23 = sld [smem:[#allocation2 + $0x54]]  ;;  %v296_v36 = vstv %s932_s3 }
  0x82   :  { %s983_s27 = sld [smem:[#allocation2 + $0x57]]  ;;  %v297_v44 = vsel %vm673_vm2, %v295_v35, %v296_v36  ;;  %v305_v45 = vstv %s942_s6 }
  0x83   :  { %s989_s28 = sld [smem:[#allocation2 + $0x56]]  ;;  %v306_v46 = vstv %s948_s7  ;;  %v299_v55 = vsel %vm684_vm3, %v297_v44, %v292_v43 }
  0x84   :  { %s996_s29 = sld [smem:[#allocation2 + $0x59]]  ;;  %v310_v47 = vstv %s954_s8  ;;  %v307_v57 = vsel %vm673_vm2, %v305_v45, %v306_v46  ;;  %v300_v1 = vsel %vm716_vm4, %v299_v55, %v298_v54 }
  0x85   :  { %s1006_s30 = sld [smem:[#allocation2 + $0x58]]  ;;  %v311_v48 = vstv %s957_s9  ;;  %v302_v9 = vsel %vm301_vm14, %v300_v1, %v277_v63 }
  0x86   :  { %s1014_s4 = sld [smem:[#allocation2 + $0x5b]]  ;;  %v315_v49 = vstv %s967_s11  ;;  %v312_v58 = vsel %vm673_vm2, %v310_v47, %v311_v48 }
  0x87   :  { %v316_v50 = vstv %s977_s23  ;;  %s478_s2 = sld [smem:[#allocation2 + $0x5a]]  ;;  %v323_v2 = vsel %vm684_vm3, %v312_v58, %v307_v57 }
  0x88   :  { %v320_v52 = vstv %s983_s27  ;;  %s1024_s10 = sld [smem:[#allocation2 + $0x5d]]  ;;  %v317_v59 = vsel %vm673_vm2, %v315_v49, %v316_v50 }
  0x89   :  { %v321_v56 = vstv %s989_s28  ;;  %s480_s12 = sld [smem:[#allocation2 + $0x5c]] }
  0x8a   :  { %v322_v60 = vsel %vm673_vm2, %v320_v52, %v321_v56  ;;  %s481_s13 = sld [smem:[#allocation2 + $0x5f]]  ;;  %v330_v61 = vstv %s996_s29 }
  0x8b   :  { %v331_v62 = vstv %s1006_s30  ;;  %s482_s15 = sld [smem:[#allocation2 + $0x5e]]  ;;  %v324_v3 = vsel %vm684_vm3, %v322_v60, %v317_v59 }
  0x8c   :  { %v335_v0 = vstv %s1014_s4  ;;  %s483_s17 = sld [smem:[#allocation2 + $0x61]]  ;;  %v332_v5 = vsel %vm673_vm2, %v330_v61, %v331_v62  ;;  %v325_v10 = vsel %vm716_vm4, %v324_v3, %v323_v2 }
  0x8d   :  { %v336_v4 = vstv %s478_s2  ;;  %s484_s14 = sld [smem:[#allocation2 + $0x60]]  ;;  %v327_v19 = vsel %vm326_vm15, %v325_v10, %v302_v9 }
  0x8e   :  { %v337_v6 = vsel %vm673_vm2, %v335_v0, %v336_v4  ;;  %v340_v7 = vstv %s1024_s10  ;;  %s485_s16 = sld [smem:[#allocation2 + $0x63]] }
  0x8f   :  { %v341_v8 = vstv %s480_s12  ;;  %s486_s18 = sld [smem:[#allocation2 + $0x62]]  ;;  %v348_v15 = vsel %vm684_vm3, %v337_v6, %v332_v5 }
  0x90   :  { %v342_v11 = vsel %vm673_vm2, %v340_v7, %v341_v8  ;;  %v345_v13 = vstv %s481_s13  ;;  %s487_s0 = sld [smem:[#allocation2 + $0x64]] }
  0x91   :  { %v346_v14 = vstv %s482_s15  ;;  %s1124_s22 = sld [smem:[#allocation22_spill]] }
  0x92   :  { %v347_v17 = vsel %vm673_vm2, %v345_v13, %v346_v14  ;;  %v355_v18 = vstv %s483_s17 }
  0x93   :  { %v349_v20 = vsel %vm684_vm3, %v347_v17, %v342_v11  ;;  %v356_v21 = vstv %s484_s14 }
  0x94   :  { %v350_v22 = vsel %vm716_vm4, %v349_v20, %v348_v15  ;;  %v357_v23 = vsel %vm673_vm2, %v355_v18, %v356_v21  ;;  %v360_v24 = vstv %s485_s16 }
  0x95   :  { %v361_v25 = vstv %s486_s18  ;;  %v352_v26 = vsel %vm351_vm0, %v350_v22, %v327_v19 }
  0x96   :  { %v362_v27 = vsel %vm673_vm2, %v360_v24, %v361_v25  ;;  %v364_v28 = vstv %s487_s0 }
  0x97   :  { %s377_s24 = sshll.u32 %s1124_s22, 4  ;;  %v365_v29 = vsel %vm684_vm3, %v362_v27, %v357_v23  ;;  %s378_s24 = int_to_ptr.hbm [resolvable:$true] %s377_s24 }
  0x98   :  { %v366_v32 = vsel %vm716_vm4, %v364_v28, %v365_v29 }
  0x99   :  { %v368_v33 = vsel %vm367_vm1, %v366_v32, %v352_v26 }
  0x9a   :  { %369 = vst [vmem:[#allocation7] sm:$0xff] %v368_v33 }
  0x9b   :  { %380 = dma.vmem_to_hbm [thread:$0]  %s376_s20, 128, %s378_s24, [#allocation4]  }
  0x9c   :  { %558 = dma.done.wait [#allocation4], 128  }
  0x9d   :  { %559 = vsyncadd [#allocation4], 4294967168 }
  0x9e   :  { %385 = vsyncpa [#allocation3], 1 }
  0x9f   :  { %386 = vsyncpa [#allocation4], 1 }
  0xa0   :  { %387 = vsyncpa [#allocation5], 1 }

</bundles_post_ra>
